<compile_context>
chip_gen: v6e
topology: v6e:2x2x1
jax: 0.10.0
libtpu: 0.0.40
codegen_flags: <defaults>
</compile_context>

<pallas_src>
import functools

import jax
import jax.numpy as jnp
from jax import lax
from jax.experimental import pallas as pl
from jax.experimental.pallas import tpu as pltpu


# ---------------------------------------------------------------------------
# activation (mirrors get_activation semantics); all math kept in f32
# ---------------------------------------------------------------------------
def _apply_act(y, act):
    if act is None:
        return y
    act = act.lower()
    if act in ("silu", "swish"):
        return y * jax.nn.sigmoid(y)
    if act == "relu":
        return jnp.maximum(y, 0.0)
    if act == "leaky_relu":
        return jnp.where(y >= 0.0, y, 0.01 * y)
    if act == "gelu":
        return jax.nn.gelu(y, approximate=False)
    if act == "hardsigmoid":
        return jnp.clip(y / 6.0 + 0.5, 0.0, 1.0)
    raise RuntimeError(f"unsupported activation: {act!r}")


def _round_up(x, m):
    return (x + m - 1) // m * m


def _vmem_capacity_bytes():
    cap = 64 * 1024 * 1024  # conservative fallback (v7x per-TC)
    try:
        info = pltpu.get_tpu_info()
        cap = int(getattr(info, "vmem_capacity_bytes", cap))
    except Exception:
        pass
    return max(cap, 32 * 1024 * 1024)


# ---------------------------------------------------------------------------
# Phase 1: conv matmul (bf16 -> f32 acc) + per-tile partial BN statistics
# ---------------------------------------------------------------------------
def _conv_stats_kernel(p_ref, w_ref, conv_ref, stats_ref):
    acc = jnp.dot(p_ref[...], w_ref[...], preferred_element_type=jnp.float32)
    conv_ref[...] = acc.astype(conv_ref.dtype)           # bf16 intermediate
    # stats reduced from the full-precision accumulator; only rows 0/1 are read
    stats_ref[0:1, :] = jnp.sum(acc, axis=0, keepdims=True)
    stats_ref[1:2, :] = jnp.sum(acc * acc, axis=0, keepdims=True)


# ---------------------------------------------------------------------------
# Phase 2: fused scale/shift + activation + in-kernel transpose to channel-major
# ---------------------------------------------------------------------------
def _bn_act_t_kernel(conv_ref, scale_ref, shift_ref, o_ref, *, act):
    y = conv_ref[...].astype(jnp.float32) * scale_ref[...] + shift_ref[...]
    y = _apply_act(y, act)
    # (tile_hw, C_pad) -> (1, C_pad, tile_hw): XLU transpose, lane-dense store
    o_ref[...] = jnp.transpose(y, (1, 0))[None, :, :].astype(o_ref.dtype)


# ---------------------------------------------------------------------------
# wrapper
# ---------------------------------------------------------------------------
def conv_norm_layer(x, weight, gamma, beta, *, stride, padding=None, act=None,
                    eps=1e-5, tile_m=None, compute_dtype=jnp.bfloat16):
    N, Cin, H, W = x.shape
    Cout, Cin_w, kh, kw = weight.shape
    assert Cin == Cin_w
    pad = (kh - 1) // 2 if padding is None else padding
    OH = (H + 2 * pad - kh) // stride + 1
    OW = (W + 2 * pad - kw) // stride + 1
    OHW = OH * OW
    K = Cin * kh * kw
    M_true = N * OHW

    K_pad = _round_up(K, 128)
    C_pad = _round_up(Cout, 128)
    out_bytes = jnp.dtype(x.dtype).itemsize

    # ---- per-generation VMEM budget -----------------------------------------
    vmem_cap = _vmem_capacity_bytes()
    budget = vmem_cap // 2                 # ~32 MiB on v7x, ~64 MiB on v5e/v6e
    vmem_limit = (vmem_cap * 3) // 4       # ~48 MiB on v7x, ~96 MiB on v5e/v6e

    # ---- phase-2 spatial tile (decoupled from phase-1's K-derated tile) ------
    def _p2_step_bytes(t):
        return (2 * t * C_pad * 2                # conv tile (bf16, dbl-buffered)
                + 2 * t * C_pad * out_bytes      # output tile (dbl-buffered)
                + t * C_pad * 4                  # f32 temp
                + 4 * C_pad * 4)                 # scale / shift
    tile_hw = min(_round_up(OHW, 128), 2048)
    while _p2_step_bytes(tile_hw) > budget and tile_hw > 128:
        tile_hw = max(128, _round_up(tile_hw // 2, 128))
    OHW_pad = _round_up(OHW, tile_hw)
    n_hw = OHW_pad // tile_hw
    if N * n_hw < 2 and tile_hw >= 256:          # give both v7x TCs work
        tile_hw = max(128, _round_up(tile_hw // 2, 128))
        OHW_pad = _round_up(OHW, tile_hw)
        n_hw = OHW_pad // tile_hw

    M_flat = N * OHW_pad                          # per-image padded, flattened

    # ---- phase-1 tile sizing: Cout tiling + M derate (weight-aware) ----------
    tile_c = C_pad
    c_units = C_pad // 128
    for u in range(c_units, 0, -1):
        if c_units % u == 0 and 2 * K_pad * (u * 128) * 2 <= budget // 3:
            tile_c = u * 128
            break
    else:
        tile_c = 128
    n_c_tiles = C_pad // tile_c

    def _p1_step_bytes(tm, tc):
        return (2 * tm * K_pad * 2     # patches tile (bf16, dbl-buffered)
                + 2 * K_pad * tc * 2   # weight tile  (bf16, dbl-buffered)
                + 2 * tm * tc * 2      # conv out tile (bf16, dbl-buffered)
                + 2 * 8 * tc * 4       # stats tile (f32, dbl-buffered)
                + tm * tc * 4)         # f32 accumulator temp

    if tile_m is None:
        tile_m = 1024
    tile_m = max(8, _round_up(min(tile_m, _round_up(M_flat, 8)), 8))
    while _p1_step_bytes(tile_m, tile_c) > budget and tile_m > 128:
        tile_m = max(128, _round_up(tile_m // 2, 8))
    M_pad1 = _round_up(M_flat, tile_m)
    n_m_tiles = M_pad1 // tile_m
    if n_m_tiles * n_c_tiles < 2 and tile_m >= 16:   # >= 2 grid points for v7x
        tile_m = max(8, _round_up(tile_m // 2, 8))
        M_pad1 = _round_up(M_flat, tile_m)
        n_m_tiles = M_pad1 // tile_m

    # ---- im2col, built directly in bf16 (NHWC; K = tap-major, cin-minor) -----
    x_nhwc = jnp.transpose(x, (0, 2, 3, 1)).astype(compute_dtype)
    xp = jnp.pad(x_nhwc, ((0, 0), (pad, pad), (pad, pad), (0, 0)))
    taps = [xp[:, i:i + stride * OH:stride, j:j + stride * OW:stride, :]
            for i in range(kh) for j in range(kw)]
    patches = jnp.stack(taps, axis=3)                  # (N, OH, OW, kh*kw, Cin) bf16
    patches = patches.reshape(N, OHW, K)
    patches = jnp.pad(patches, ((0, 0), (0, OHW_pad - OHW), (0, K_pad - K)))
    patches = patches.reshape(M_flat, K_pad)
    patches = jnp.pad(patches, ((0, M_pad1 - M_flat), (0, 0)))

    # weight (Cout, Cin, kh, kw) -> (kh, kw, Cin, Cout) -> (K, Cout), same K order
    w_mat = jnp.transpose(weight, (2, 3, 1, 0)).reshape(K, Cout)
    w_mat = jnp.pad(w_mat, ((0, K_pad - K), (0, C_pad - Cout))).astype(compute_dtype)

    cparams = pltpu.CompilerParams(
        dimension_semantics=("parallel", "parallel"),
        vmem_limit_bytes=vmem_limit,
    )

    # ---- phase 1: conv tiles (bf16) + partial statistics (f32) ---------------
    conv, stats = pl.pallas_call(
        _conv_stats_kernel,
        out_shape=(jax.ShapeDtypeStruct((M_pad1, C_pad), compute_dtype),
                   jax.ShapeDtypeStruct((n_m_tiles * 8, C_pad), jnp.float32)),
        grid=(n_m_tiles, n_c_tiles),
        in_specs=[
            pl.BlockSpec((tile_m, K_pad), lambda i, j: (i, 0)),
            pl.BlockSpec((K_pad, tile_c), lambda i, j: (0, j)),
        ],
        out_specs=(
            pl.BlockSpec((tile_m, tile_c), lambda i, j: (i, j)),
            pl.BlockSpec((8, tile_c), lambda i, j: (i, j)),
        ),
        compiler_params=cparams,
    )(patches, w_mat)

    # ---- tiny per-channel finalize (XLA): mean/var -> fused scale & shift ----
    stats = stats.reshape(n_m_tiles, 8, C_pad)
    s_tot = jnp.sum(stats[:, 0, :], axis=0)
    q_tot = jnp.sum(stats[:, 1, :], axis=0)
    mean = s_tot / M_true                              # biased stats over N*OH*OW
    var = jnp.maximum(q_tot / M_true - mean * mean, 0.0)
    gamma_p = jnp.pad(gamma.astype(jnp.float32), (0, C_pad - Cout))
    beta_p = jnp.pad(beta.astype(jnp.float32), (0, C_pad - Cout))
    scale = gamma_p * lax.rsqrt(var + eps)
    shift = beta_p - mean * scale

    # ---- phase 2: normalize + activation + transpose to channel-major --------
    out = pl.pallas_call(
        functools.partial(_bn_act_t_kernel, act=act),
        out_shape=jax.ShapeDtypeStruct((N, C_pad, OHW_pad), x.dtype),
        grid=(N, n_hw),
        in_specs=[
            pl.BlockSpec((tile_hw, C_pad), lambda n, j: (n * n_hw + j, 0)),
            pl.BlockSpec((1, C_pad), lambda n, j: (0, 0)),
            pl.BlockSpec((1, C_pad), lambda n, j: (0, 0)),
        ],
        out_specs=pl.BlockSpec((1, C_pad, tile_hw), lambda n, j: (n, 0, j)),
        compiler_params=cparams,
    )(conv, scale.reshape(1, C_pad), shift.reshape(1, C_pad))

    # already NCHW-ordered; just strip padding and restore spatial dims
    return out[:, :Cout, :OHW].reshape(N, Cout, OH, OW)


# ---------------------------------------------------------------------------
# pure-JAX reference (mirrors the kernel's bf16 matmul operands and the bf16
# conv intermediate; BN statistics computed in f32 like the kernel)
# ---------------------------------------------------------------------------
def conv_norm_layer_ref(x, weight, gamma, beta, *, stride, padding=None,
                        act=None, eps=1e-5, conv_dtype=jnp.float32,
                        intermediate_dtype=None):
    kh = weight.shape[2]
    pad = (kh - 1) // 2 if padding is None else padding
    y = lax.conv_general_dilated(
        x.astype(conv_dtype), weight.astype(conv_dtype),
        (stride, stride), [(pad, pad), (pad, pad)],
        dimension_numbers=("NCHW", "OIHW", "NCHW"),
        preferred_element_type=jnp.float32)
    mean = y.mean(axis=(0, 2, 3), keepdims=True)
    var = ((y - mean) ** 2).mean(axis=(0, 2, 3), keepdims=True)
    scale = gamma.reshape(1, -1, 1, 1) * lax.rsqrt(var + eps)
    shift = beta.reshape(1, -1, 1, 1) - mean * scale
    yq = y if intermediate_dtype is None else y.astype(intermediate_dtype).astype(jnp.float32)
    out = yq * scale + shift
    return _apply_act(out, act).astype(x.dtype)


if __name__ == "__main__":
    # ConvNormLayer(ch_in=4, ch_out=8, kernel=3, stride=1, act='silu') on (2,4,16,16)
    key = jax.random.PRNGKey(0)
    k_x, k_w, k_g, k_b = jax.random.split(key, 4)

    N, Cin, H, W = 2, 4, 16, 16
    Cout, ksize, stride = 8, 3, 1
    act = "silu"

    x = jax.random.normal(k_x, (N, Cin, H, W), dtype=jnp.float32)
    weight = jax.random.normal(k_w, (Cout, Cin, ksize, ksize), dtype=jnp.float32) * 0.1
    gamma = 1.0 + 0.1 * jax.random.normal(k_g, (Cout,), dtype=jnp.float32)
    beta = 0.1 * jax.random.normal(k_b, (Cout,), dtype=jnp.float32)

    # tile_m=128 -> 4 M-tiles: exercises the tiled / partial-stats path
    out = conv_norm_layer(x, weight, gamma, beta, stride=stride, act=act, tile_m=128)
    out = jax.block_until_ready(out)

    # reference with the same bf16 matmul operands and bf16 conv intermediate
    ref = conv_norm_layer_ref(x, weight, gamma, beta, stride=stride, act=act,
                              conv_dtype=jnp.bfloat16,
                              intermediate_dtype=jnp.bfloat16)
    ref = jax.block_until_ready(ref)

    assert out.shape == (N, Cout, H, W), out.shape
    max_err = float(jnp.max(jnp.abs(out - ref)))
    assert jnp.allclose(out, ref, atol=5e-3, rtol=5e-3), max_err

    print("KERNEL_OK")
</pallas_src>

<mosaic_0001>
module attributes {stable_mosaic.version = 11 : i64} {
  func.func @_conv_stats_kernel(%arg0: i32, %arg1: i32, %arg2: memref<128x128xbf16, #tpu.memory_space<vmem>>, %arg3: memref<128x128xbf16, #tpu.memory_space<vmem>>, %arg4: memref<128x128xbf16, #tpu.memory_space<vmem>>, %arg5: memref<8x128xf32, #tpu.memory_space<vmem>>) attributes {dimension_semantics = [#tpu.dimension_semantics<parallel>, #tpu.dimension_semantics<parallel>], iteration_bounds = array<i64: 4, 1>, scalar_prefetch = 0 : i64, scratch_operands = 0 : i64, tpu.core_type = #tpu.core_type<tc>, window_params = [{transform_indices = @transform_0, window_bounds = array<i64: 128, 128>}, {transform_indices = @transform_1, window_bounds = array<i64: 128, 128>}, {transform_indices = @transform_2, window_bounds = array<i64: 128, 128>}, {transform_indices = @transform_3, window_bounds = array<i64: 8, 128>}]} {
    %c0 = arith.constant 0 : index
    %c0_0 = arith.constant 0 : index
    %0 = vector.load %arg2[%c0, %c0_0] : memref<128x128xbf16, #tpu.memory_space<vmem>>, vector<128x128xbf16>
    %c0_1 = arith.constant 0 : index
    %c0_2 = arith.constant 0 : index
    %1 = vector.load %arg3[%c0_1, %c0_2] : memref<128x128xbf16, #tpu.memory_space<vmem>>, vector<128x128xbf16>
    %cst = arith.constant dense<0.000000e+00> : vector<128x128xf32>
    %2 = tpu.matmul %0, %1, %cst {dimension_numbers = #tpu.dot_dimension_numbers<[1], [0], [0], [1], [0, 0, 1, 1], [], []>} : vector<128x128xbf16>, vector<128x128xbf16>, vector<128x128xf32> -> vector<128x128xf32>
    %3 = arith.truncf %2 : vector<128x128xf32> to vector<128x128xbf16>
    %c0_3 = arith.constant 0 : index
    %c0_4 = arith.constant 0 : index
    %4 = vector.load %arg4[%c0_3, %c0_4] : memref<128x128xbf16, #tpu.memory_space<vmem>>, vector<128x128xbf16>
    tpu.vector_store %arg4[%c0_3, %c0_4], %3 {strides = array<i32>} : memref<128x128xbf16, #tpu.memory_space<vmem>>, vector<128x128xbf16>,
    %cst_5 = arith.constant dense<0.000000e+00> : vector<128xf32>
    %5 = vector.multi_reduction <add>, %2, %cst_5 [0] : vector<128x128xf32> to vector<128xf32>
    %6 = vector.shape_cast %5 : vector<128xf32> to vector<1x128xf32>
    %c0_6 = arith.constant 0 : index
    %c0_7 = arith.constant 0 : index
    %7 = vector.load %arg5[%c0_6, %c0_7] : memref<8x128xf32, #tpu.memory_space<vmem>>, vector<1x128xf32>
    tpu.vector_store %arg5[%c0_6, %c0_7], %6 {strides = array<i32>} : memref<8x128xf32, #tpu.memory_space<vmem>>, vector<1x128xf32>,
    %8 = arith.mulf %2, %2 : vector<128x128xf32>
    %cst_8 = arith.constant dense<0.000000e+00> : vector<128xf32>
    %9 = vector.multi_reduction <add>, %8, %cst_8 [0] : vector<128x128xf32> to vector<128xf32>
    %10 = vector.shape_cast %9 : vector<128xf32> to vector<1x128xf32>
    %c1 = arith.constant 1 : index
    %c0_9 = arith.constant 0 : index
    %11 = vector.load %arg5[%c1, %c0_9] : memref<8x128xf32, #tpu.memory_space<vmem>>, vector<1x128xf32>
    tpu.vector_store %arg5[%c1, %c0_9], %10 {strides = array<i32>} : memref<8x128xf32, #tpu.memory_space<vmem>>, vector<1x128xf32>,
    return
  }
  func.func @transform_0(%arg0: i32, %arg1: i32) -> (i32, i32) {
    %c0_i32 = arith.constant 0 : i32
    %c0_i32_0 = arith.constant 0 : i32
    return %arg0, %c0_i32 : i32, i32
  }
  func.func @transform_1(%arg0: i32, %arg1: i32) -> (i32, i32) {
    %c0_i32 = arith.constant 0 : i32
    %c0_i32_0 = arith.constant 0 : i32
    return %c0_i32, %arg1 : i32, i32
  }
  func.func @transform_2(%arg0: i32, %arg1: i32) -> (i32, i32) {
    %c0_i32 = arith.constant 0 : i32
    return %arg0, %arg1 : i32, i32
  }
  func.func @transform_3(%arg0: i32, %arg1: i32) -> (i32, i32) {
    %c0_i32 = arith.constant 0 : i32
    return %arg0, %arg1 : i32, i32
  }
}

</mosaic_0001>

<bundles_post_ra>
// kernel: tpu_custom_call.1
= control target key start
LH: loop header
LB: loop body
LE: loop exit
PB: predicated region body
PF: predicated region fallthrough
CT: control target
= control target key end

     0   :  { %9 = vsyncpa [#allocation3], 0  ;;  %s1515_s0 = inlined_call_operand.hbm [shape: bf16[512,128], index: 0, kind: input, shape index: {}]   ;;  %s1516_s1 = inlined_call_operand.hbm [shape: bf16[128,128], index: 1, kind: input, shape index: {}]   ;;  %s1517_s2 = inlined_call_operand.hbm [shape: bf16[512,128], index: 2, kind: output, shape index: {0}]   ;;  %s1518_s3 = inlined_call_operand.hbm [shape: f32[32,128], index: 3, kind: output, shape index: {1}]  }
   0x1   :  { %11 = vsyncpa [#allocation3 + $0x1], 0 }
   0x2   :  { %12 = vsyncpa [#allocation6], 0 }
   0x3   :  { %13 = vsyncpa [#allocation4], 0 }
   0x4   :  { %15 = vsyncpa [#allocation4 + $0x1], 0 }
   0x5   :  { %16 = vsyncpa [#allocation9], 0 }
   0x6   :  { %18 = vsyncpa [#allocation9 + $0x1], 0  ;;  %s1245_s12 = smov 0   ;;  %s1247_s13 = smov 0  }
   0x7   :  { %s1249_s14 = smov 0   ;;  %s1251_s15 = smov 0  }
   0x8   :  { %s1253_s16 = smov 0   ;;  %s1255_s17 = smov 0  }
   0x9 LB: > { %s768_s18 = sadd.s32 4294967295, %s1215_s17   ;;  %s769_s19 = sadd.s32 4294967294, %s1215_s17   ;;  %s1215_s17 = sphi %s1255_s17, %s24_s17   ;;  %s1211_s16 = sphi %s1253_s16, %s1539_s16   ;;  %s1207_s15 = sphi %s1251_s15, %s1538_s15   ;;  %s1203_s14 = sphi %s1249_s14, %s1537_s14   ;;  %s1199_s13 = sphi %s1247_s13, %s1536_s13   ;;  %s1195_s12 = sphi %s1245_s12, %s1535_s12  }
   0xa   : > { %p56_p0 = scmp.ne.s32.totalorder %s1199_s13, %s1195_s12  ;;  %p1279_p1 = scmp.eq.s32.totalorder %s768_s18, 0 }
   0xb   : > { %p1283_p2 = scmp.eq.s32.totalorder %s768_s18, 3  ;;  %p114_p3 = scmp.eq.s32.totalorder %s769_s19, 3 }
   0xc   : > { %p1289_p4 = por %p1279_p1, %p56_p0  ;;  %p770_p5 = scmp.ge.s32.totalorder %s1215_s17, 1 }
   0xd   : > { %p1294_p6 = por %p114_p3, %p56_p0  ;;  %p149_p7 = scmp.lt.s32.totalorder %s1215_s17, 5 }
   0xe   : > { %s1217_s25 = smov [#allocation5]   ;;  %s36_s28 = sadd.s32 1, %s1211_s16 }
   0xf   : > { %s1525_s23 = scalar_select %p1294_p6, 1, 0 }
  0x10   : > { %p1299_p8 = pnand %p770_p5, %p149_p7  ;;  %s163_s26 = sshll.u32 %s1217_s25, 4  ;;  %s164_s26 = int_to_ptr.vmem [resolvable:$true] %s163_s26 }
  0x11   : > { %s1058_s29 = scalar_lea.vmem %s164_s26, 1024  ;;  %p1066_p3 = scmp.lt.s32.totalorder %s164_s26, %s164_s26 }
  0x12   : > { %p959_p9 = pneg %p1299_p8  ;;  %p1059_p12 = scmp.ne.s32.totalorder %s164_s26, %s1058_s29 }
  0x13   : > { %p1067_p5 = scmp.lt.s32.totalorder %s1058_s29, %s1058_s29 }
  0x14   : > { %p1307_p10 = pnand %p959_p9, %p1279_p1 }
  0x15   : > { %p1068_p7 = por %p1067_p5, %p1066_p3 }
  0x16   : > { %p1049_p11 = pneg %p1307_p10 }
  0x18   : > { %p1061_p13 = pnand %p1059_p12, %p1049_p11 }
  0x1a   : > { %p1062_p0 = pneg %p1061_p13 }
  0x1c   : > { %p1069_p6 = pnand %p1068_p7, %p1062_p0 }
  0x1e   : > { %1072 = shalt.err (!%p1069_p6)
}
  0x1f   : > { %s1519_s30 = smov 64   ;;  %s1520_s4 = smov 4  }
  0x20   : > { %962 = dma.hbm_to_vmem [thread:$0]  (!%p1307_p10), %s1516_s1, 1024, %s164_s26, [#allocation6], %s1519_s30, %s1519_s30, %s1520_s4  }
  0x21   : > { %p38_p6 = scmp.ge.s32.totalorder %s36_s28, 4  ;;  %s43_s7 = sadd.s32 1, %s1203_s14 }
  0x22   : > { %p50_p9 = scmp.ne.s32.totalorder %s1203_s14, %s1199_s13  ;;  %p51_p11 = scmp.eq.s32.totalorder %s1215_s17, 0 }
  0x23   : > { %s1541_s28 = smov (%p38_p6, %s36_s28), 0  ;;  %p975_p0 = scmp.lt.s32.totalorder %s1215_s17, 4 }
  0x24   : > { %p1328_p12 = por %p51_p11, %p50_p9  ;;  %p1334_p13 = por %p1283_p2, %p50_p9 }
  0x25   : > { %s40_s10 = ssub.s32 %s1211_s16, %s1541_s28  ;;  %s177_s11 = sand.u32 1, %s1203_s14  }
  0x26   : > { %s1529_s9 = scalar_select %p1334_p13, 1, 0 }
  0x27   : > { %p41_p10 = scmp.eq.s32.totalorder %s40_s10, 0  ;;  %s773_s18 = sshll.u32 %s177_s11, 6 }
  0x28   : > { %s820_s25 = sshll.u32 %s1211_s16, 10  ;;  %s181_s5 = scalar_lea.vmem [#allocation2], %s773_s18 }
  0x29   : > { %s1343_s19 = scalar_select %p41_p10, %s1203_s14, %s43_s7  }
  0x2a   : > { %s187_s29 = scalar_lea.hbm %s1515_s0, %s820_s25  ;;  %s188_s6 = sshll.u32 %s181_s5, 4  ;;  %s189_s6 = int_to_ptr.vmem [resolvable:$true] %s188_s6 }
  0x2b   : > { %p1351_p2 = pnand %p975_p0, %p1328_p12  ;;  %s178_s30 = scalar_lea.sflag [#allocation3], %s177_s11 }
  0x2c   : > { %s1086_s10 = scalar_lea.vmem %s189_s6, 1024  ;;  %s1220_s7 = smov [#allocation2]  }
  0x2d   : > { %p1075_p3 = pneg %p1351_p2  ;;  %p1087_p5 = scmp.ne.s32.totalorder %s189_s6, %s1086_s10 }
  0x2e   : > { %s1091_s4 = sshll.u32 %s1220_s7, 4  ;;  %s1092_s4 = int_to_ptr.vmem [resolvable:$false] %s1091_s4 }
  0x2f   : > { %p1089_p7 = pnand %p1087_p5, %p1075_p3  ;;  %s1093_s25 = scalar_lea.vmem %s1092_s4, 2048 }
  0x30   : > { %p1094_p9 = scmp.lt.s32.totalorder %s189_s6, %s1092_s4  ;;  %p1095_p11 = scmp.lt.s32.totalorder %s1093_s25, %s1086_s10 }
  0x31   : > { %p1090_p6 = pneg %p1089_p7 }
  0x32   : > { %p1096_p10 = por %p1095_p11, %p1094_p9 }
  0x34   : > { %p1097_p13 = pnand %p1096_p10, %p1090_p6 }
  0x36   : > { %1100 = shalt.err (!%p1097_p13)
}
  0x37   : > { %s1531_s8 = smov 4   ;;  %s1532_s18 = smov 64  }
  0x38   : > { %966 = dma.hbm_to_vmem [thread:$0]  (!%p1351_p2), %s187_s29, 1024, %s189_s6, %s178_s30, %s1532_s18, %s1532_s18, %s1531_s8  }
  0x39   : > { %200 = sbr.rel (%p1299_p8) target bundleno = 364 (0x16c), region = 28  ;;  %s1365_s11 = sand.u32 (!%p1299_p8), 1, %s1199_s13  }
  0x3a   : > { %s777_s4 = sshll.u32 (!%p1299_p8), %s1365_s11, 6  ;;  %s203_s26 = scalar_lea.sflag (!%p1299_p8), [#allocation3], %s1365_s11 }
  0x3b   : > { %s1371_s27 = scalar_lea.vmem (!%p1299_p8), [#allocation2], %s777_s4 }
  0x3e   : > { %1178 = dma.done.wait (%p1289_p4), %s203_s26, 1024  }
  0x3f   : > { %1180 = vsyncadd (%p1289_p4), %s203_s26, 4294966272 }
  0x40   : > { %1182 = dma.done.wait (%p1279_p1), [#allocation6], 1024  }
  0x41   : > { %1184 = vsyncadd (%p1279_p1), [#allocation6], 4294966272  ;;  %v1031_v0 = vld [vmem:[#allocation5 + $0x38] sm:$0xff]   ;;  %v1032_v1 = vld [vmem:[#allocation5 + $0x30] sm:$0xff]   ;;  %s1401_s20 = scalar_lea.vmem [#allocation7], %s777_s4  ;;  %s837_s24 = sshll.u32 %s1207_s15, 10 }
  0x42   : > { %901 = vmatprep.subr.bf16.mxu0 %v1031_v0  ;;  %933 = vmatprep.subr.bf16.mxu1 %v1031_v0  ;;  %v1033_v2 = vld [vmem:[#allocation5 + $0x28] sm:$0xff]   ;;  %v1034_v3 = vld [vmem:[#allocation5 + $0x20] sm:$0xff]   ;;  %v1035_v5 = vld [vmem:[#allocation5 + $0x18] sm:$0xff]   ;;  %s626_s22 = sshll.u32 %s1401_s20, 4  ;;  %s1423_s5 = scalar_lea.hbm %s1517_s2, %s837_s24  ;;  %s1425_s22 = int_to_ptr.vmem [resolvable:$true] %s626_s22 }
  0x43   : > { %902 = vmatpush3.bf16.msra.mxu0 %v1031_v0  ;;  %941 = vmatpush3.bf16.msra.mxu1 %v1031_v0  ;;  %v1039_v4 = vld [vmem:[%s1371_s27] sm:$0xff]   ;;  %v1036_v7 = vld [vmem:[#allocation5 + $0x10] sm:$0xff]   ;;  %v1037_v8 = vld [vmem:[#allocation5 + $0x8] sm:$0xff]   ;;  %s607_s6 = scalar_lea.sflag [#allocation4], %s1365_s11  ;;  %s1101_s21 = scalar_lea.vmem %s1425_s22, 1024 }
  0x44   : > { %903 = vmatprep.subr.bf16.mxu0 %v1032_v1  ;;  %934 = vmatprep.subr.bf16.mxu1 %v1032_v1  ;;  %v1043_v6 = vld [vmem:[%s1371_s27 + $0x20] sm:$0xff]   ;;  %v1040_v10 = vld [vmem:[%s1371_s27 + $0x8] sm:$0xff]   ;;  %v1041_v12 = vld [vmem:[%s1371_s27 + $0x10] sm:$0xff]   ;;  %p1102_p1 = scmp.ne.s32.totalorder %s1425_s22, %s1101_s21  ;;  %p1533_p4 = scmp.ne.s32.totalorder %s1529_s9, 0 }
  0x45   : > { %917 = vmatprep.mubr.bf16.mxu0 %v1039_v4  ;;  %925 = vmatprep.mubr.bf16.mxu1 %v1043_v6  ;;  %v1038_v9 = vld [vmem:[#allocation5] sm:$0xff]   ;;  %v1044_v11 = vld [vmem:[%s1371_s27 + $0x28] sm:$0xff]   ;;  %v1045_v13 = vld [vmem:[%s1371_s27 + $0x30] sm:$0xff]   ;;  %s1221_s10 = smov [#allocation7]  }
  0x46   : > { %v1042_v14 = vld [vmem:[%s1371_s27 + $0x18] sm:$0xff]   ;;  %p1103_p8 = pnand %p1102_p1, %p1533_p4  ;;  %s1105_s7 = sshll.u32 %s1221_s10, 4  ;;  %s1106_s7 = int_to_ptr.vmem [resolvable:$false] %s1105_s7 }
  0x47   : > { %904 = vmatpush3.bf16.msra.mxu0 %v1032_v1  ;;  %942 = vmatpush3.bf16.msra.mxu1 %v1032_v1  ;;  %v1046_v15 = vld [vmem:[%s1371_s27 + $0x38] sm:$0xff]   ;;  %s1107_s25 = scalar_lea.vmem %s1106_s7, 2048  ;;  %p1108_p13 = scmp.lt.s32.totalorder %s1425_s22, %s1106_s7 }
  0x48   : > { %905 = vmatprep.subr.bf16.mxu0 %v1033_v2  ;;  %935 = vmatprep.subr.bf16.mxu1 %v1033_v2  ;;  %p1104_p12 = pneg %p1103_p8  ;;  %p1109_p0 = scmp.lt.s32.totalorder %s1107_s25, %s1101_s21 }
  0x4a   : > { %p1110_p2 = por %p1109_p0, %p1108_p13 }
  0x4b   : > { %906 = vmatpush3.bf16.msra.mxu0 %v1033_v2  ;;  %943 = vmatpush3.bf16.msra.mxu1 %v1033_v2 }
  0x4c   : > { %907 = vmatprep.subr.bf16.mxu0 %v1034_v3  ;;  %936 = vmatprep.subr.bf16.mxu1 %v1034_v3  ;;  %p1111_p3 = pnand %p1110_p2, %p1104_p12 }
  0x4f   : > { %908 = vmatpush3.bf16.msra.mxu0 %v1034_v3  ;;  %944 = vmatpush3.bf16.msra.mxu1 %v1034_v3 }
  0x50   : > { %909 = vmatprep.subr.bf16.mxu0 %v1035_v5  ;;  %937 = vmatprep.subr.bf16.mxu1 %v1035_v5 }
  0x53   : > { %910 = vmatpush3.bf16.msra.mxu0 %v1035_v5  ;;  %945 = vmatpush3.bf16.msra.mxu1 %v1035_v5 }
  0x54   : > { %911 = vmatprep.subr.bf16.mxu0 %v1036_v7  ;;  %938 = vmatprep.subr.bf16.mxu1 %v1036_v7 }
  0x57   : > { %912 = vmatpush3.bf16.msra.mxu0 %v1036_v7  ;;  %946 = vmatpush3.bf16.msra.mxu1 %v1036_v7 }
  0x58   : > { %913 = vmatprep.subr.bf16.mxu0 %v1037_v8  ;;  %939 = vmatprep.subr.bf16.mxu1 %v1037_v8 }
  0x5b   : > { %914 = vmatpush3.bf16.msra.mxu0 %v1037_v8  ;;  %947 = vmatpush3.bf16.msra.mxu1 %v1037_v8 }
  0x5c   : > { %915 = vmatprep.subr.bf16.mxu0 %v1038_v9  ;;  %940 = vmatprep.subr.bf16.mxu1 %v1038_v9 }
  0x5f   : > { %916 = vmatpush3.bf16.msra.mxu0 %v1038_v9  ;;  %948 = vmatpush3.bf16.msra.mxu1 %v1038_v9 }
  0x62   : > { %918 = vmatmul.mubr.bf16.vlgmr.msra.gmra.mxu0 %v1040_v10  ;;  %926 = vmatmul.mubr.bf16.vlgmr.msra.gmra.mxu1 %v1044_v11 }
  0x63   : > { %921 = vmatprep.mubr.bf16.mxu0 %v1041_v12  ;;  %929 = vmatprep.mubr.bf16.mxu1 %v1045_v13 }
  0x6a   : > { %922 = vmatmul.mubr.bf16.gmra.mxu0 %v1042_v14  ;;  %930 = vmatmul.mubr.bf16.gmra.mxu1 %v1046_v15 }
 0x122   : > { %v919_v16 = vpop.f32.mrf.mxu0  ;;  %v1389_v17 = vpop.f32.mrf.mxu1 }
 0x123   : > { %v570_v33 = vmul.f32 %v919_v16, %v919_v16 }
 0x124   : > { %v403_v18 = vpop.f32.mrf.mxu0  ;;  %v1391_v19 = vpop.f32.mrf.mxu1 }
 0x125   : > { %v568_v24 = vmul.f32 %v403_v18, %v403_v18 }
 0x126   : > { %v920_v20 = vpop.f32.mrf.mxu0  ;;  %v1393_v21 = vpop.f32.mrf.mxu1 }
 0x127   : > { %v846_v22 = vpack.c.bf16 %v920_v20, %v919_v16  ;;  %v866_v23 = vpack.c.bf16 %v1393_v21, %v1389_v17  ;;  %v571_v38 = vmul.f32 %v920_v20, %v920_v20 }
 0x128   : > { %v406_v25 = vpop.f32.mrf.mxu0  ;;  %v1397_v26 = vpop.f32.mrf.mxu1 }
 0x129   : > { %878 = vst [vmem:[%s1401_s20 + $0x8] sm:$0xff] %v846_v22   ;;  %v841_v27 = vpack.c.bf16 %v406_v25, %v403_v18  ;;  %v546_v28 = vadd.f32 %v406_v25, %v403_v18  ;;  %v569_v29 = vmul.f32 %v406_v25, %v406_v25  ;;  %882 = vst [vmem:[%s1401_s20 + $0x28] sm:$0xff] %v866_v23  }
 0x12a   : > { %v861_v30 = vpack.c.bf16 %v1397_v26, %v1391_v19  ;;  %v923_v31 = vpop.f32.mrf.mxu0  ;;  %v1407_v32 = vpop.f32.mrf.mxu1 }
 0x12b   : > { %842 = vst [vmem:[%s1401_s20] sm:$0xff] %v841_v27   ;;  %v547_v34 = vadd.f32 %v919_v16, %v546_v28  ;;  %v584_v35 = vadd.f32 %v569_v29, %v568_v24  ;;  %v574_v55 = vmul.f32 %v923_v31, %v923_v31 }
 0x12c   : > { %881 = vst [vmem:[%s1401_s20 + $0x20] sm:$0xff] %v861_v30   ;;  %v419_v36 = vpop.f32.mrf.mxu0  ;;  %v1411_v37 = vpop.f32.mrf.mxu1 }
 0x12d   : > { %v585_v39 = vadd.f32 %v584_v35, %v570_v33  ;;  %v548_v40 = vadd.f32 %v920_v20, %v547_v34  ;;  %v572_v44 = vmul.f32 %v419_v36, %v419_v36 }
 0x12e   : > { %v924_v41 = vpop.f32.mrf.mxu0  ;;  %v1414_v42 = vpop.f32.mrf.mxu1 }
 0x12f   : > { %v549_v43 = vadd.f32 %v548_v40, %v419_v36  ;;  %v586_v45 = vadd.f32 %v585_v39, %v571_v38  ;;  %v856_v46 = vpack.c.bf16 %v924_v41, %v923_v31  ;;  %v876_v48 = vpack.c.bf16 %v1414_v42, %v1407_v32 }
 0x130   : > { %v422_v47 = vpop.f32.mrf.mxu0  ;;  %v454_v49 = vpop.f32.mrf.mxu1  ;;  %v575_v58 = vmul.f32 %v924_v41, %v924_v41 }
 0x131   : > { %v587_v50 = vadd.f32 %v586_v45, %v572_v44  ;;  %880 = vst [vmem:[%s1401_s20 + $0x18] sm:$0xff] %v856_v46   ;;  %v851_v51 = vpack.c.bf16 %v422_v47, %v419_v36  ;;  %v550_v52 = vadd.f32 %v549_v43, %v422_v47  ;;  %v573_v53 = vmul.f32 %v422_v47, %v422_v47 }
 0x132   : > { %884 = vst [vmem:[%s1401_s20 + $0x38] sm:$0xff] %v876_v48   ;;  %v871_v54 = vpack.c.bf16 %v454_v49, %v1411_v37 }
 0x133   : > { %879 = vst [vmem:[%s1401_s20 + $0x10] sm:$0xff] %v851_v51   ;;  %v551_v56 = vadd.f32 %v923_v31, %v550_v52  ;;  %v588_v57 = vadd.f32 %v587_v50, %v573_v53 }
 0x134   : > { %883 = vst [vmem:[%s1401_s20 + $0x30] sm:$0xff] %v871_v54  }
 0x135   : > { %v552_v59 = vadd.f32 %v924_v41, %v551_v56  ;;  %v589_v60 = vadd.f32 %v588_v57, %v574_v55 }
 0x136   : > { %1114 = shalt.err (!%p1111_p3)
}
 0x137   : > { %s1115_s8 = scalar_lea.hbm %s1423_s5, 1024  ;;  %s1119_s26 = scalar_lea.hbm %s1517_s2, 4096 }
 0x138   : > { %p1116_p5 = scmp.ne.s32.totalorder %s1423_s5, %s1115_s8  ;;  %p1120_p9 = scmp.lt.s32.totalorder %s1423_s5, %s1517_s2 }
 0x139   : > { %p1121_p11 = scmp.lt.s32.totalorder %s1119_s26, %s1115_s8 }
 0x13a   : > { %p1117_p7 = pnand %p1116_p5, %p1533_p4 }
 0x13b   : > { %p1122_p10 = por %p1121_p11, %p1120_p9 }
 0x13c   : > { %p1118_p6 = pneg %p1117_p7 }
 0x13e   : > { %p1123_p1 = pnand %p1122_p10, %p1118_p6 }
 0x140   : > { %1126 = shalt.err (!%p1123_p1)
}
 0x141   : > { %s1222_s24 = smov 64   ;;  %s1223_s30 = smov 4   ;;  %v576_v61 = vmul.f32 %v1391_v19, %v1391_v19  ;;  %v590_v62 = vadd.f32 %v589_v60, %v575_v58  ;;  %v553_v63 = vadd.f32 %v552_v59, %v1391_v19  ;;  %v577_v1 = vmul.f32 %v1397_v26, %v1397_v26 }
 0x142   : > { %955 = dma.vmem_to_hbm [thread:$0]  (%p1533_p4), %s1425_s22, 1024, %s1423_s5, %s607_s6, %s1222_s24, %s1222_s24, %s1223_s30   ;;  %v578_v3 = vmul.f32 %v1389_v17, %v1389_v17  ;;  %v579_v6 = vmul.f32 %v1393_v21, %v1393_v21  ;;  %v580_v10 = vmul.f32 %v1411_v37, %v1411_v37  ;;  %v581_v14 = vmul.f32 %v454_v49, %v454_v49 }
 0x143   : > { %v554_v0 = vadd.f32 %v553_v63, %v1397_v26  ;;  %v591_v2 = vadd.f32 %v590_v62, %v576_v61  ;;  %v582_v15 = vmul.f32 %v1407_v32, %v1407_v32  ;;  %v583_v18 = vmul.f32 %v1414_v42, %v1414_v42  ;;  %s780_s22 = sshll.u32 %s1365_s11, 3  ;;  %s817_s29 = sshll.u32 %s1207_s15, 7 }
 0x144   : > { %s237_s5 = scalar_lea.vmem [#allocation8], %s780_s22  ;;  %s641_s7 = scalar_lea.hbm %s1518_s3, %s817_s29 }
 0x145   : > { %v555_v4 = vadd.f32 %v1389_v17, %v554_v0  ;;  %v592_v5 = vadd.f32 %v591_v2, %v577_v1  ;;  %s643_s6 = sshll.u32 %s237_s5, 4  ;;  %s612_s25 = scalar_lea.sflag [#allocation9], %s1365_s11  ;;  %s644_s6 = int_to_ptr.vmem [resolvable:$true] %s643_s6 }
 0x146   : > { %s1127_s8 = scalar_lea.vmem %s644_s6, 128  ;;  %s1224_s18 = smov [#allocation8]  }
 0x147   : > { %v593_v7 = vadd.f32 %v592_v5, %v578_v3  ;;  %v556_v8 = vadd.f32 %v1393_v21, %v555_v4  ;;  %p1128_p8 = scmp.ne.s32.totalorder %s644_s6, %s1127_s8  ;;  %s1131_s15 = sshll.u32 %s1224_s18, 4  ;;  %s1132_s15 = int_to_ptr.vmem [resolvable:$false] %s1131_s15 }
 0x148   : > { %s1133_s4 = scalar_lea.vmem %s1132_s15, 256  ;;  %p1134_p0 = scmp.lt.s32.totalorder %s644_s6, %s1132_s15 }
 0x149   : > { %v557_v9 = vadd.f32 %v556_v8, %v1411_v37  ;;  %v594_v11 = vadd.f32 %v593_v7, %v579_v6  ;;  %p1129_p12 = pnand %p1128_p8, %p1533_p4  ;;  %p1135_p2 = scmp.lt.s32.totalorder %s1133_s4, %s1127_s8 }
 0x14b   : > { %v595_v12 = vadd.f32 %v594_v11, %v580_v10  ;;  %v558_v13 = vadd.f32 %v557_v9, %v454_v49  ;;  %p1130_p13 = pneg %p1129_p12  ;;  %p1136_p3 = por %p1135_p2, %p1134_p0 }
 0x14d   : > { %v559_v16 = vadd.f32 %v1407_v32, %v558_v13  ;;  %v596_v17 = vadd.f32 %v595_v12, %v581_v14  ;;  %p1137_p5 = pnand %p1136_p3, %p1130_p13 }
 0x14f   : > { %v560_v19 = vadd.f32 %v1414_v42, %v559_v16  ;;  %v597_v20 = vadd.f32 %v596_v17, %v582_v15 }
 0x151   : > { %v561_v21 = vrot.slane %v560_v19, 4  ;;  %v598_v22 = vadd.f32 %v597_v20, %v583_v18 }
 0x153   : > { %v562_v23 = vadd.f32 %v561_v21, %v560_v19  ;;  %v599_v24 = vrot.slane %v598_v22, 4 }
 0x155   : > { %v563_v25 = vrot.slane %v562_v23, 2  ;;  %v600_v26 = vadd.f32 %v599_v24, %v598_v22 }
 0x157   : > { %v564_v27 = vadd.f32 %v563_v25, %v562_v23  ;;  %v601_v28 = vrot.slane %v600_v26, 2 }
 0x159   : > { %v565_v29 = vrot.slane %v564_v27, 1  ;;  %v602_v30 = vadd.f32 %v601_v28, %v600_v26 }
 0x15b   : > { %v566_v31 = vadd.f32 %v565_v29, %v564_v27  ;;  %v603_v32 = vrot.slane %v602_v30, 1 }
 0x15d   : > { %567 = vst [vmem:[%s237_s5] sm:$0x1] %v566_v31  ;;  %v604_v33 = vadd.f32 %v603_v32, %v602_v30 }
 0x15f   : > { %605 = vst [vmem:[%s237_s5 + $0x1] sm:$0x1] %v604_v33 }
 0x160   : > { %1140 = shalt.err (!%p1137_p5)
}
 0x161   : > { %s1141_s26 = scalar_lea.hbm %s641_s7, 128  ;;  %s1145_s20 = scalar_lea.hbm %s1518_s3, 512 }
 0x162   : > { %p1142_p7 = scmp.ne.s32.totalorder %s641_s7, %s1141_s26  ;;  %p1146_p11 = scmp.lt.s32.totalorder %s641_s7, %s1518_s3 }
 0x163   : > { %p1147_p10 = scmp.lt.s32.totalorder %s1145_s20, %s1141_s26 }
 0x164   : > { %p1143_p6 = pnand %p1142_p7, %p1533_p4 }
 0x165   : > { %p1148_p1 = por %p1147_p10, %p1146_p11 }
 0x166   : > { %p1144_p9 = pneg %p1143_p6 }
 0x168   : > { %p1149_p8 = pnand %p1148_p1, %p1144_p9 }
 0x16a   : > { %1152 = shalt.err (!%p1149_p8)
}
 0x16b   : > { %956 = dma.vmem_to_hbm [thread:$0]  (%p1533_p4), %s644_s6, 128, %s641_s7, %s612_s25  }
 0x16c PF: > { %p977_p12 = scmp.ge.s32.totalorder %s1215_s17, 2  ;;  %s655_s22 = sand.u32 1, %s1195_s12  }
 0x16d   : > { %p1534_p13 = scmp.ne.s32.totalorder %s1525_s23, 0  ;;  %s656_s29 = scalar_lea.sflag [#allocation4], %s655_s22 }
 0x16f   : > { %p968_p0 = pnand %p977_p12, %p1534_p13 }
 0x171   : > { %p969_p2 = pneg %p968_p0 }
 0x173   : > { %1186 = dma.done.wait (%p969_p2), %s656_s29, 1024  }
 0x174   : > { %1188 = vsyncadd (%p969_p2), %s656_s29, 4294966272  ;;  %s665_s5 = scalar_lea.sflag [#allocation9], %s655_s22 }
 0x175   : > { %1190 = dma.done.wait (%p969_p2), %s665_s5, 128  }
 0x176   : > { %1192 = vsyncadd (%p969_p2), %s665_s5, 4294967168  ;;  %s24_s17 = sadd.s32 1, %s1215_s17   ;;  %s1535_s12 = smov %s1199_s13 }
 0x177   : > { %p21_p3 = scmp.ge.s32.totalorder %s24_s17, 6   ;;  %s1536_s13 = smov %s1203_s14 }
 0x178   : > { %s1537_s14 = smov %s1343_s19  ;;  %s1538_s15 = smov %s1211_s16 }
 0x179   : > { %s1539_s16 = smov %s1541_s28  ;;  %23 = sbr.rel (!%p21_p3) target bundleno = 9 (0x9), region = 95 }
 0x17e   :  { %670 = vsyncpa [#allocation3], 1 }
 0x17f   :  { %672 = vsyncpa [#allocation3 + $0x1], 1 }
 0x180   :  { %673 = vsyncpa [#allocation6], 1 }
 0x181   :  { %674 = vsyncpa [#allocation4], 1 }
 0x182   :  { %676 = vsyncpa [#allocation4 + $0x1], 1 }
 0x183   :  { %677 = vsyncpa [#allocation9], 1 }
 0x184   :  { %679 = vsyncpa [#allocation9 + $0x1], 1 }

</bundles_post_ra>
